<compile_context>
chip_gen: v7x
topology: tpu7x:2x2x1
jax: 0.10.0
libtpu: 0.0.40
codegen_flags: <defaults>
</compile_context>

<pallas_src>
import functools

import numpy as np
import jax
import jax.numpy as jnp
from jax.experimental import pallas as pl
from jax.experimental.pallas import tpu as pltpu

EPS = 1e-5
LANE = 128


# ----------------------------- helpers ---------------------------------------

def _ceil_to(n, m):
    return ((n + m - 1) // m) * m


def _pad_last(a, width):
    pad = width - a.shape[-1]
    if pad == 0:
        return a
    cfg = [(0, 0)] * (a.ndim - 1) + [(0, pad)]
    return jnp.pad(a, cfg)


def _pick_rows_tile(m, target=256):
    # largest tile <= target that divides m (keeps BN stats exact: no padded
    # garbage rows ever enter the accumulators)
    if m <= target:
        return m
    for t in (target, 128, 64, 32, 16, 8):
        if m % t == 0:
            return t
    return m


def _bn_scale_shift(stats, gamma_p, beta_p, count):
    # stats: (2, Cp) [sum; sumsq] accumulated in-kernel over the full batch.
    s = stats[0:1, :]
    ss = stats[1:2, :]
    mean = s / count
    var = jnp.maximum(ss / count - mean * mean, 0.0)   # biased var (PyTorch norm)
    scale = gamma_p * jax.lax.rsqrt(var + EPS)
    shift = beta_p - mean * scale
    return scale, shift


# ----------------------------- kernels ----------------------------------------

def _pw_conv_kernel(x_ref, isc_ref, ish_ref, w_ref, y_ref, st_ref, *, pre_bn_relu):
    # 1x1 conv as an MXU matmul.  Optionally applies the *previous* layer's
    # deferred BN (scale/shift) + ReLU to the input tile first.  Writes the
    # un-normalized result and accumulates per-channel sum / sumsq for the
    # *next* BN into a resident (2, Cout) accumulator.
    @pl.when(pl.program_id(0) == 0)
    def _():
        st_ref[...] = jnp.zeros_like(st_ref)

    x = x_ref[...]
    if pre_bn_relu:
        x = jnp.maximum(x * isc_ref[...] + ish_ref[...], 0.0)
    y = jnp.dot(x, w_ref[...], preferred_element_type=jnp.float32)
    y_ref[...] = y

    ssum = jnp.sum(y, axis=0, keepdims=True)
    ssq = jnp.sum(y * y, axis=0, keepdims=True)
    st_ref[...] += jnp.concatenate([ssum, ssq], axis=0)


def _gconv_kernel(x_ref, isc_ref, ish_ref, w_ref, y_ref, st_ref, xp_ref,
                  *, H, W, Ho, Wo, stride, gs):
    # Grouped 3x3 conv, one image per grid step.  Applies the deferred BN1
    # (scale/shift) + ReLU, builds a zero-padded slab in VMEM scratch (border
    # is zeroed once), and forms the 9 taps by shifted in-VMEM slices.
    Cp = x_ref.shape[-1]

    @pl.when(pl.program_id(0) == 0)
    def _():
        st_ref[...] = jnp.zeros_like(st_ref)
        xp_ref[...] = jnp.zeros_like(xp_ref)   # border stays zero afterwards

    xn = jnp.maximum(x_ref[0] * isc_ref[...] + ish_ref[...], 0.0)   # (H, W, Cp)
    xp_ref[1:H + 1, 1:W + 1, :] = xn
    xp = xp_ref[...]                                                # (H+2, W+2, Cp)

    wv = w_ref[...]
    acc = jnp.zeros((Ho, Wo, Cp), jnp.float32)
    for dy in range(3):
        for dx in range(3):
            k = dy * 3 + dx
            tap = xp[dy:dy + (Ho - 1) * stride + 1:stride,
                     dx:dx + (Wo - 1) * stride + 1:stride, :]
            if gs == 1:
                # depthwise (groups == C): pure VPU multiply-add, no MXU waste
                acc = acc + tap * wv[k:k + 1, :]
            else:
                # TODO(synk): gs>1 fallback uses a block-diagonal (Cp, Cp) weight
                # per tap, wasting ~groups x MXU FLOPs; replace with per-group
                # contraction if large-C DPN configs are needed.
                acc = acc + jnp.dot(tap.reshape(Ho * Wo, Cp), wv[k],
                                    preferred_element_type=jnp.float32
                                    ).reshape(Ho, Wo, Cp)
    y_ref[0] = acc

    t = jnp.sum(acc, axis=0)
    ssum = jnp.sum(t, axis=0, keepdims=True)
    t2 = jnp.sum(acc * acc, axis=0)
    ssq = jnp.sum(t2, axis=0, keepdims=True)
    st_ref[...] += jnp.concatenate([ssum, ssq], axis=0)


def _merge_kernel(a_ref, b_ref, sa_ref, ha_ref, sb_ref, hb_ref, o_ref, *, c, ca, cb):
    # Applies the deferred bn3 to a and bn_sc (or identity) to b, then the DPN
    # merge + relu3 with sliced lane stores (no jnp.concatenate).
    a = a_ref[...] * sa_ref[...] + ha_ref[...]
    b = b_ref[...] * sb_ref[...] + hb_ref[...]
    o_ref[...] = jnp.zeros_like(o_ref)                 # lane padding stays zero
    o_ref[:, :c] = jnp.maximum(a[:, :c] + b[:, :c], 0.0)
    if ca > c:
        o_ref[:, c:ca] = jnp.maximum(a[:, c:ca], 0.0)
    if cb > c:
        o_ref[:, ca:ca + cb - c] = jnp.maximum(b[:, c:cb], 0.0)


# ----------------------------- pallas_call wrappers ---------------------------

def _pw_conv(x2d, w, in_scale, in_shift, *, pre_bn_relu, rows_tile=256):
    M, Cin = x2d.shape
    Cout = w.shape[1]
    TM = _pick_rows_tile(M, rows_tile)
    y, st = pl.pallas_call(
        functools.partial(_pw_conv_kernel, pre_bn_relu=pre_bn_relu),
        grid=(M // TM,),
        in_specs=[
            pl.BlockSpec((TM, Cin), lambda i: (i, 0)),
            pl.BlockSpec((1, Cin), lambda i: (0, 0)),
            pl.BlockSpec((1, Cin), lambda i: (0, 0)),
            pl.BlockSpec((Cin, Cout), lambda i: (0, 0)),   # weights stay resident
        ],
        out_specs=[
            pl.BlockSpec((TM, Cout), lambda i: (i, 0)),
            pl.BlockSpec((2, Cout), lambda i: (0, 0)),     # resident stats accum
        ],
        out_shape=[
            jax.ShapeDtypeStruct((M, Cout), jnp.float32),
            jax.ShapeDtypeStruct((2, Cout), jnp.float32),
        ],
        compiler_params=pltpu.CompilerParams(dimension_semantics=("arbitrary",)),
    )(x2d, in_scale, in_shift, w)
    return y, st


def _gconv(x4d, in_scale, in_shift, w, *, stride, gs):
    N, H, W, Cp = x4d.shape
    Ho = (H - 1) // stride + 1
    Wo = (W - 1) // stride + 1
    kernel = functools.partial(_gconv_kernel, H=H, W=W, Ho=Ho, Wo=Wo,
                               stride=stride, gs=gs)
    w_ndim = w.ndim
    y, st = pl.pallas_call(
        kernel,
        grid=(N,),
        in_specs=[
            pl.BlockSpec((1, H, W, Cp), lambda n: (n, 0, 0, 0)),
            pl.BlockSpec((1, Cp), lambda n: (0, 0)),
            pl.BlockSpec((1, Cp), lambda n: (0, 0)),
            pl.BlockSpec(w.shape, lambda n: (0,) * w_ndim),
        ],
        out_specs=[
            pl.BlockSpec((1, Ho, Wo, Cp), lambda n: (n, 0, 0, 0)),
            pl.BlockSpec((2, Cp), lambda n: (0, 0)),
        ],
        out_shape=[
            jax.ShapeDtypeStruct((N, Ho, Wo, Cp), jnp.float32),
            jax.ShapeDtypeStruct((2, Cp), jnp.float32),
        ],
        scratch_shapes=[pltpu.VMEM((H + 2, W + 2, Cp), jnp.float32)],
        compiler_params=pltpu.CompilerParams(dimension_semantics=("arbitrary",)),
    )(x4d, in_scale, in_shift, w)
    return y, st


def _merge(a2d, b2d, sa, ha, sb, hb, *, c, ca, cb, rows_tile=256):
    M, Cap = a2d.shape
    Cbp = b2d.shape[1]
    Coutp = _ceil_to(ca + cb - c, LANE)
    TM = _pick_rows_tile(M, rows_tile)
    return pl.pallas_call(
        functools.partial(_merge_kernel, c=c, ca=ca, cb=cb),
        grid=(M // TM,),
        in_specs=[
            pl.BlockSpec((TM, Cap), lambda i: (i, 0)),
            pl.BlockSpec((TM, Cbp), lambda i: (i, 0)),
            pl.BlockSpec((1, Cap), lambda i: (0, 0)),
            pl.BlockSpec((1, Cap), lambda i: (0, 0)),
            pl.BlockSpec((1, Cbp), lambda i: (0, 0)),
            pl.BlockSpec((1, Cbp), lambda i: (0, 0)),
        ],
        out_specs=pl.BlockSpec((TM, Coutp), lambda i: (i, 0)),
        out_shape=jax.ShapeDtypeStruct((M, Coutp), jnp.float32),
        compiler_params=pltpu.CompilerParams(dimension_semantics=("parallel",)),
    )(a2d, b2d, sa, ha, sb, hb)


# ----------------------------- parameter prep ---------------------------------

def init_bottleneck_params(key, in_C, C, residual_C, dense_C, is_first, groups=24):
    out_C = residual_C + dense_C
    ks = jax.random.split(key, 12)
    p = {
        "w1": 0.1 * jax.random.normal(ks[0], (in_C, C), jnp.float32),
        "g1": 1.0 + 0.1 * jax.random.normal(ks[1], (C,), jnp.float32),
        "b1": 0.1 * jax.random.normal(ks[2], (C,), jnp.float32),
        "w2": 0.1 * jax.random.normal(ks[3], (C, C // groups, 3, 3), jnp.float32),
        "g2": 1.0 + 0.1 * jax.random.normal(ks[4], (C,), jnp.float32),
        "b2": 0.1 * jax.random.normal(ks[5], (C,), jnp.float32),
        "w3": 0.1 * jax.random.normal(ks[6], (C, out_C), jnp.float32),
        "g3": 1.0 + 0.1 * jax.random.normal(ks[7], (out_C,), jnp.float32),
        "b3": 0.1 * jax.random.normal(ks[8], (out_C,), jnp.float32),
    }
    if is_first:
        p["w_sc"] = 0.1 * jax.random.normal(ks[9], (in_C, out_C), jnp.float32)
        p["g_sc"] = 1.0 + 0.1 * jax.random.normal(ks[10], (out_C,), jnp.float32)
        p["b_sc"] = 0.1 * jax.random.normal(ks[11], (out_C,), jnp.float32)
    return p


def _prep_params(params, *, in_C, C, out_C, groups, is_first):
    in_Cp = _ceil_to(in_C, LANE)
    Cp = _ceil_to(C, LANE)
    out_Cp = _ceil_to(out_C, LANE)
    gs = C // groups

    def pad_mat(w, r, c2):
        return jnp.zeros((r, c2), jnp.float32).at[:w.shape[0], :w.shape[1]].set(w)

    def pad_vec(v, c2):
        return jnp.zeros((1, c2), jnp.float32).at[0, :v.shape[0]].set(v)

    p = {
        "w1": pad_mat(params["w1"], in_Cp, Cp),
        "g1": pad_vec(params["g1"], Cp), "b1": pad_vec(params["b1"], Cp),
        "g2": pad_vec(params["g2"], Cp), "b2": pad_vec(params["b2"], Cp),
        "w3": pad_mat(params["w3"], Cp, out_Cp),
        "g3": pad_vec(params["g3"], out_Cp), "b3": pad_vec(params["b3"], out_Cp),
    }
    w2 = np.asarray(jax.device_get(params["w2"]))   # PyTorch layout (C, C//g, 3, 3)
    if gs == 1:
        wdw = np.zeros((9, Cp), np.float32)
        for dy in range(3):
            for dx in range(3):
                wdw[dy * 3 + dx, :C] = w2[:, 0, dy, dx]
        p["w2"] = jnp.asarray(wdw)
    else:
        wbd = np.zeros((9, Cp, Cp), np.float32)     # [tap, cin, cout] block-diag
        for dy in range(3):
            for dx in range(3):
                k = dy * 3 + dx
                for g in range(groups):
                    blk = w2[g * gs:(g + 1) * gs, :, dy, dx]
                    wbd[k, g * gs:(g + 1) * gs, g * gs:(g + 1) * gs] = blk.T
        p["w2"] = jnp.asarray(wbd)
    if is_first:
        p["w_sc"] = pad_mat(params["w_sc"], in_Cp, out_Cp)
        p["g_sc"] = pad_vec(params["g_sc"], out_Cp)
        p["b_sc"] = pad_vec(params["b_sc"], out_Cp)
    return p


# ----------------------------- Bottleneck forward -----------------------------

def bottleneck_forward(x_nchw, params, *, in_C, C, residual_C, dense_C,
                       stride, is_first, groups=24):
    assert C % groups == 0
    c = residual_C
    out_C = residual_C + dense_C
    gs = C // groups
    N, _, H, W = x_nchw.shape
    Ho = (H - 1) // stride + 1
    Wo = (W - 1) // stride + 1
    in_Cp = _ceil_to(in_C, LANE)
    Cp = _ceil_to(C, LANE)

    pp = _prep_params(params, in_C=in_C, C=C, out_C=out_C,
                      groups=groups, is_first=is_first)

    x = jnp.transpose(x_nchw, (0, 2, 3, 1)).astype(jnp.float32)   # NHWC
    x = _pad_last(x, in_Cp)
    x2d = x.reshape(N * H * W, in_Cp)

    ones_in = jnp.ones((1, in_Cp), jnp.float32)
    zeros_in = jnp.zeros((1, in_Cp), jnp.float32)

    # conv1 (1x1): un-normalized output + bn1 sum/sumsq
    y1, st1 = _pw_conv(x2d, pp["w1"], ones_in, zeros_in, pre_bn_relu=False)
    sc1, sh1 = _bn_scale_shift(st1, pp["g1"], pp["b1"], N * H * W)

    # conv2 (3x3, groups, stride): deferred bn1+relu applied in-kernel,
    # taps formed from a padded VMEM slab (no HBM im2col)
    y2, st2 = _gconv(y1.reshape(N, H, W, Cp), sc1, sh1, pp["w2"],
                     stride=stride, gs=gs)
    sc2, sh2 = _bn_scale_shift(st2, pp["g2"], pp["b2"], N * Ho * Wo)

    # conv3 (1x1): deferred bn2+relu applied in-kernel, bn3 stats accumulated
    y3, st3 = _pw_conv(y2.reshape(N * Ho * Wo, Cp), pp["w3"], sc2, sh2,
                       pre_bn_relu=True)
    sc3, sh3 = _bn_scale_shift(st3, pp["g3"], pp["b3"], N * Ho * Wo)

    # shortcut branch
    if is_first:
        xs = x[:, ::stride, ::stride, :]
        sc_y, st_sc = _pw_conv(xs.reshape(N * Ho * Wo, in_Cp), pp["w_sc"],
                               ones_in, zeros_in, pre_bn_relu=False)
        sb, hb = _bn_scale_shift(st_sc, pp["g_sc"], pp["b_sc"], N * Ho * Wo)
        cb = out_C
    else:
        assert stride == 1, "identity shortcut requires stride == 1"
        sc_y = x2d
        sb = jnp.ones((1, in_Cp), jnp.float32)
        hb = jnp.zeros((1, in_Cp), jnp.float32)
        cb = in_C

    # fused bn3 + shortcut-bn + DPN merge + relu3
    out2d = _merge(y3, sc_y, sc3, sh3, sb, hb, c=c, ca=out_C, cb=cb)
    Cout = out_C + cb - c
    out = out2d.reshape(N, Ho, Wo, -1)[:, :, :, :Cout]
    return jnp.transpose(out, (0, 3, 1, 2))   # back to NCHW


# ----------------------------- pure-JAX reference ------------------------------

def _reference_forward(x_nchw, params, *, in_C, C, residual_C, dense_C,
                       stride, is_first, groups=24):
    c = residual_C
    hi = jax.lax.Precision.HIGHEST
    x = jnp.transpose(x_nchw, (0, 2, 3, 1)).astype(jnp.float32)

    def bn_affine(y, g, b):
        flat = y.reshape(-1, y.shape[-1])
        mean = jnp.mean(flat, axis=0)
        var = jnp.mean((flat - mean) ** 2, axis=0)
        return (y - mean) * jax.lax.rsqrt(var + EPS) * g + b

    if is_first:
        xs = x[:, ::stride, ::stride, :]
        sc = bn_affine(jnp.einsum("nhwi,io->nhwo", xs, params["w_sc"], precision=hi),
                       params["g_sc"], params["b_sc"])
    else:
        sc = x

    y1 = jnp.maximum(bn_affine(jnp.einsum("nhwi,io->nhwo", x, params["w1"], precision=hi),
                               params["g1"], params["b1"]), 0.0)
    w2 = jnp.transpose(params["w2"], (2, 3, 1, 0))   # HWIO
    y2 = jax.lax.conv_general_dilated(
        y1, w2, window_strides=(stride, stride), padding=((1, 1), (1, 1)),
        dimension_numbers=("NHWC", "HWIO", "NHWC"),
        feature_group_count=groups, precision=hi)
    y2 = jnp.maximum(bn_affine(y2, params["g2"], params["b2"]), 0.0)
    y3 = bn_affine(jnp.einsum("nhwi,io->nhwo", y2, params["w3"], precision=hi),
                   params["g3"], params["b3"])
    out = jnp.concatenate([y3[..., :c] + sc[..., :c], y3[..., c:], sc[..., c:]], axis=-1)
    return jnp.transpose(jnp.maximum(out, 0.0), (0, 3, 1, 2))


# ----------------------------- main --------------------------------------------

if __name__ == "__main__":
    # small DPN-consistent config: C must be divisible by groups=24
    in_C, C, residual_C, dense_C, stride, is_first = 32, 24, 32, 8, 1, True
    N, H, W = 2, 16, 16

    key = jax.random.PRNGKey(0)
    k_x, k_p = jax.random.split(key)
    x = jax.random.normal(k_x, (N, in_C, H, W), jnp.float32)
    params = init_bottleneck_params(k_p, in_C, C, residual_C, dense_C, is_first)

    out = bottleneck_forward(x, params, in_C=in_C, C=C, residual_C=residual_C,
                             dense_C=dense_C, stride=stride, is_first=is_first)
    out = jax.block_until_ready(out)

    out_C = residual_C + dense_C
    Ho = (H - 1) // stride + 1
    Wo = (W - 1) // stride + 1
    expected_shape = (N, 2 * out_C - residual_C, Ho, Wo)
    assert out.shape == expected_shape, (out.shape, expected_shape)
    assert bool(jnp.all(jnp.isfinite(out)))

    ref = jax.block_until_ready(
        _reference_forward(x, params, in_C=in_C, C=C, residual_C=residual_C,
                           dense_C=dense_C, stride=stride, is_first=is_first))
    err = float(jnp.max(jnp.abs(out - ref)))
    assert err < 2e-2, f"max abs error vs reference: {err}"
    print("KERNEL_OK")
</pallas_src>

<mosaic_0001>
module attributes {stable_mosaic.version = 11 : i64} {
  func.func @_pw_conv_kernel(%arg0: i32, %arg1: memref<256x128xf32, #tpu.memory_space<vmem>>, %arg2: memref<1x128xf32, #tpu.memory_space<vmem>>, %arg3: memref<1x128xf32, #tpu.memory_space<vmem>>, %arg4: memref<128x128xf32, #tpu.memory_space<vmem>>, %arg5: memref<256x128xf32, #tpu.memory_space<vmem>>, %arg6: memref<2x128xf32, #tpu.memory_space<vmem>>) attributes {dimension_semantics = [#tpu.dimension_semantics<arbitrary>], iteration_bounds = array<i64: 2>, scalar_prefetch = 0 : i64, scratch_operands = 0 : i64, tpu.core_type = #tpu.core_type<tc>, window_params = [{transform_indices = @transform_0, window_bounds = array<i64: 256, 128>}, {pipeline_mode = #tpu.pipeline_mode<synchronous>, transform_indices = @transform_1, window_bounds = array<i64: 1, 128>}, {pipeline_mode = #tpu.pipeline_mode<synchronous>, transform_indices = @transform_2, window_bounds = array<i64: 1, 128>}, {pipeline_mode = #tpu.pipeline_mode<synchronous>, transform_indices = @transform_3, window_bounds = array<i64: 128, 128>}, {transform_indices = @transform_4, window_bounds = array<i64: 256, 128>}, {pipeline_mode = #tpu.pipeline_mode<synchronous>, transform_indices = @transform_5, window_bounds = array<i64: 2, 128>}]} {
    %c0_i32 = arith.constant 0 : i32
    %0 = arith.cmpi eq, %arg0, %c0_i32 : i32
    %1 = arith.extui %0 : i1 to i32
    %c0_i32_0 = arith.constant 0 : i32
    %2 = arith.cmpi ne, %1, %c0_i32_0 : i32
    scf.if %2 {
      %cst_12 = arith.constant 0.000000e+00 : f32
      %16 = vector.broadcast %cst_12 : f32 to vector<2x128xf32>
      %c0_13 = arith.constant 0 : index
      %c0_14 = arith.constant 0 : index
      %17 = vector.load %arg6[%c0_13, %c0_14] : memref<2x128xf32, #tpu.memory_space<vmem>>, vector<2x128xf32>
      tpu.vector_store %arg6[%c0_13, %c0_14], %16 {strides = array<i32>} : memref<2x128xf32, #tpu.memory_space<vmem>>, vector<2x128xf32>,
    } else {
    }
    %c0 = arith.constant 0 : index
    %c0_1 = arith.constant 0 : index
    %3 = vector.load %arg1[%c0, %c0_1] : memref<256x128xf32, #tpu.memory_space<vmem>>, vector<256x128xf32>
    %c0_2 = arith.constant 0 : index
    %c0_3 = arith.constant 0 : index
    %4 = vector.load %arg4[%c0_2, %c0_3] : memref<128x128xf32, #tpu.memory_space<vmem>>, vector<128x128xf32>
    %cst = arith.constant dense<0.000000e+00> : vector<256x128xf32>
    %5 = tpu.matmul %3, %4, %cst {dimension_numbers = #tpu.dot_dimension_numbers<[1], [0], [0], [1], [0, 0, 1, 1], [], []>} : vector<256x128xf32>, vector<128x128xf32>, vector<256x128xf32> -> vector<256x128xf32>
    %c0_4 = arith.constant 0 : index
    %c0_5 = arith.constant 0 : index
    %6 = vector.load %arg5[%c0_4, %c0_5] : memref<256x128xf32, #tpu.memory_space<vmem>>, vector<256x128xf32>
    tpu.vector_store %arg5[%c0_4, %c0_5], %5 {strides = array<i32>} : memref<256x128xf32, #tpu.memory_space<vmem>>, vector<256x128xf32>,
    %cst_6 = arith.constant dense<0.000000e+00> : vector<128xf32>
    %7 = vector.multi_reduction <add>, %5, %cst_6 [0] : vector<256x128xf32> to vector<128xf32>
    %8 = vector.shape_cast %7 : vector<128xf32> to vector<1x128xf32>
    %9 = arith.mulf %5, %5 : vector<256x128xf32>
    %cst_7 = arith.constant dense<0.000000e+00> : vector<128xf32>
    %10 = vector.multi_reduction <add>, %9, %cst_7 [0] : vector<256x128xf32> to vector<128xf32>
    %11 = vector.shape_cast %10 : vector<128xf32> to vector<1x128xf32>
    %c0_8 = arith.constant 0 : index
    %c0_9 = arith.constant 0 : index
    %12 = vector.load %arg6[%c0_8, %c0_9] : memref<2x128xf32, #tpu.memory_space<vmem>>, vector<2x128xf32>
    %13 = tpu.concatenate %8, %11 in 0 : vector<1x128xf32>, vector<1x128xf32> -> vector<2x128xf32>
    %14 = arith.addf %12, %13 : vector<2x128xf32>
    %c0_10 = arith.constant 0 : index
    %c0_11 = arith.constant 0 : index
    %15 = vector.load %arg6[%c0_10, %c0_11] : memref<2x128xf32, #tpu.memory_space<vmem>>, vector<2x128xf32>
    tpu.vector_store %arg6[%c0_10, %c0_11], %14 {strides = array<i32>} : memref<2x128xf32, #tpu.memory_space<vmem>>, vector<2x128xf32>,
    return
  }
  func.func @transform_0(%arg0: i32) -> (i32, i32) {
    %c0_i32 = arith.constant 0 : i32
    %c0_i32_0 = arith.constant 0 : i32
    return %arg0, %c0_i32 : i32, i32
  }
  func.func @transform_1(%arg0: i32) -> (i32, i32) {
    %c0_i32 = arith.constant 0 : i32
    %c0_i32_0 = arith.constant 0 : i32
    %c0_i32_1 = arith.constant 0 : i32
    return %c0_i32, %c0_i32_0 : i32, i32
  }
  func.func @transform_2(%arg0: i32) -> (i32, i32) {
    %c0_i32 = arith.constant 0 : i32
    %c0_i32_0 = arith.constant 0 : i32
    %c0_i32_1 = arith.constant 0 : i32
    return %c0_i32, %c0_i32_0 : i32, i32
  }
  func.func @transform_3(%arg0: i32) -> (i32, i32) {
    %c0_i32 = arith.constant 0 : i32
    %c0_i32_0 = arith.constant 0 : i32
    %c0_i32_1 = arith.constant 0 : i32
    return %c0_i32, %c0_i32_0 : i32, i32
  }
  func.func @transform_4(%arg0: i32) -> (i32, i32) {
    %c0_i32 = arith.constant 0 : i32
    %c0_i32_0 = arith.constant 0 : i32
    return %arg0, %c0_i32 : i32, i32
  }
  func.func @transform_5(%arg0: i32) -> (i32, i32) {
    %c0_i32 = arith.constant 0 : i32
    %c0_i32_0 = arith.constant 0 : i32
    %c0_i32_1 = arith.constant 0 : i32
    return %c0_i32, %c0_i32_0 : i32, i32
  }
}

</mosaic_0001>

<bundles_post_ra>
// kernel: tpu_custom_call.1
= control target key start
LH: loop header
LB: loop body
LE: loop exit
PB: predicated region body
PF: predicated region fallthrough
CT: control target
= control target key end

     0   :  { %11 = vsyncpa [#allocation3], 0  ;;  %s1661_s0 = inlined_call_operand.hbm [shape: f32[512,128], index: 0, kind: input, shape index: {}]   ;;  %s1662_s1 = inlined_call_operand.vmem [shape: f32[1,128], index: 1, kind: input, shape index: {}]   ;;  %s1663_s2 = inlined_call_operand.vmem [shape: f32[1,128], index: 2, kind: input, shape index: {}]   ;;  %s1664_s3 = inlined_call_operand.hbm [shape: f32[128,128], index: 3, kind: input, shape index: {}]   ;;  %s1665_s4 = inlined_call_operand.hbm [shape: f32[512,128], index: 4, kind: output, shape index: {0}]   ;;  %s1666_s5 = inlined_call_operand.hbm [shape: f32[2,128], index: 5, kind: output, shape index: {1}]  }
   0x1   :  { %13 = vsyncpa [#allocation3 + $0x1], 0 }
   0x2   :  { %14 = vsyncpa [#allocation6], 0 }
   0x3   :  { %15 = vsyncpa [#allocation4], 0 }
   0x4   :  { %17 = vsyncpa [#allocation4 + $0x1], 0 }
   0x5   :  { %18 = vsyncpa [#allocation9], 0  ;;  %s1264_s18 = smov 0   ;;  %s1266_s1 = smov 0  }
   0x6   :  { %s1268_s2 = smov 0   ;;  %s1270_s19 = smov 0  }
   0x7 LB: > { %s1285_s20 = sadd.s32 4294967295, %s1223_s19   ;;  %s799_s21 = sadd.s32 4294967294, %s1223_s19   ;;  %s1223_s19 = sphi %s1270_s19, %s1692_s19   ;;  %s1219_s2 = sphi %s1268_s2, %s1691_s2   ;;  %s1215_s1 = sphi %s1266_s1, %s1690_s1   ;;  %s1211_s18 = sphi %s1264_s18, %s1689_s18  }
   0x8   : > { %p44_p0 = scmp.ne.s32.totalorder %s1215_s1, %s1211_s18  ;;  %p1667_p1 = scmp.eq.s32.totalorder %s1285_s20, 0 }
   0x9   : > { %p137_p3 = scmp.eq.s32.totalorder %s799_s21, 1  ;;  %p800_p5 = scmp.ge.s32.totalorder %s1223_s19, 1 }
   0xa   : > { %p1294_p4 = por %p1667_p1, %p44_p0  ;;  %p165_p7 = scmp.lt.s32.totalorder %s1223_s19, 3 }
   0xb   : > { %p1299_p6 = por %p137_p3, %p44_p0  ;;  %s1225_s25 = smov [#allocation5]  }
   0xc   : > { %s1670_s22 = scalar_select %p1294_p4, 1, 0 }
   0xd   : > { %s1671_s23 = scalar_select %p1299_p6, 1, 0 }
   0xe   : > { %p1305_p9 = pnand %p800_p5, %p165_p7  ;;  %s183_s26 = sshll.u32 %s1225_s25, 4  ;;  %s1309_s26 = int_to_ptr.vmem [resolvable:$true] %s183_s26 }
   0xf   : > { %s1321_s28 = sadd.s32 1, %s1223_s19   ;;  %s31_s29 = sadd.s32 1, %s1219_s2 }
  0x10   : > { %s1672_s24 = scalar_select %p1305_p9, 1, 0 }
  0x11   : > { %p1008_p10 = pneg %p1305_p9  ;;  %s28_s30 = ssub.s32 %s1223_s19, %s1321_s28 }
  0x12   : > { %s1065_s8 = scalar_lea.hbm %s1664_s3, 2048 }
  0x13   : > { %p1316_p12 = pnand %p1008_p10, %p1667_p1  ;;  %p1066_p13 = scmp.ne.s32.totalorder %s1664_s3, %s1065_s8 }
  0x14   : > { %p1072_p7 = scmp.lt.u32.totalorder %s1065_s8, %s1664_s3 }
  0x15   : > { %p1067_p0 = pneg %p1316_p12 }
  0x17   : > { %p1068_p3 = pnand %p1067_p0, %p1066_p13 }
  0x19   : > { %p1069_p5 = pneg %p1068_p3 }
  0x1b   : > { %p1074_p10 = pnand %p1072_p7, %p1069_p5 }
  0x1d   : > { %1077 = shalt.err (!%p1074_p10)
}
  0x1e   : > { %s1078_s13 = scalar_lea.vmem %s1309_s26, 2048  ;;  %p1086_p2 = scmp.lt.s32.totalorder %s1309_s26, %s1309_s26 }
  0x1f   : > { %p1079_p11 = scmp.ne.s32.totalorder %s1309_s26, %s1078_s13  ;;  %p1087_p6 = scmp.lt.s32.totalorder %s1078_s13, %s1078_s13 }
  0x21   : > { %p1081_p8 = pnand %p1079_p11, %p1067_p0  ;;  %p1088_p4 = por %p1087_p6, %p1086_p2 }
  0x23   : > { %p1082_p1 = pneg %p1081_p8 }
  0x25   : > { %p1089_p9 = pnand %p1088_p4, %p1082_p1 }
  0x27   : > { %1092 = shalt.err (!%p1089_p9)
}
  0x28   : > { %s1226_s14 = smov 128   ;;  %s1227_s15 = smov 8  }
  0x29   : > { %1011 = dma.hbm_to_vmem [thread:$0]  (!%p1316_p12), %s1664_s3, 2048, %s1309_s26, [#allocation6], %s1226_s14, %s1226_s14, %s1227_s15  }
  0x2a   : > { %p29_p1 = scmp.eq.s32.totalorder %s28_s30, 0  ;;  %p38_p2 = scmp.ne.s32.totalorder %s1219_s2, %s1215_s1 }
  0x2b   : > { %p39_p4 = scmp.eq.s32.totalorder %s1223_s19, 0  ;;  %p1021_p6 = scmp.lt.s32.totalorder %s1223_s19, 2 }
  0x2c   : > { %s1355_s21 = scalar_select %p29_p1, %s1219_s2, %s31_s29  }
  0x2d   : > { %p40_p8 = por %p39_p4, %p38_p2  ;;  %p1674_p9 = scmp.eq.s32.totalorder %s1285_s20, 1 }
  0x2e   : > { %s197_s27 = sand.u32 1, %s1219_s2   ;;  %s818_s6 = sshll.u32 %s1223_s19, 12 }
  0x2f   : > { %p1359_p11 = por %p1674_p9, %p38_p2  ;;  %s803_s7 = sshll.u32 %s197_s27, 8 }
  0x30   : > { %s1368_s10 = scalar_lea.hbm %s1661_s0, %s818_s6  ;;  %s201_s26 = scalar_lea.vmem [#allocation2], %s803_s7 }
  0x31   : > { %s208_s29 = sshll.u32 %s201_s26, 4  ;;  %p1370_p12 = pnand %p1021_p6, %p40_p8  ;;  %s1374_s29 = int_to_ptr.vmem [resolvable:$true] %s208_s29 }
  0x32   : > { %s1376_s11 = scalar_lea.sflag [#allocation3], %s197_s27  ;;  %s1093_s12 = scalar_lea.hbm %s1368_s10, 4096 }
  0x33   : > { %p1094_p13 = scmp.ne.s32.totalorder %s1368_s10, %s1093_s12  ;;  %p1095_p0 = pneg %p1370_p12 }
  0x34   : > { %s1098_s17 = scalar_lea.hbm %s1661_s0, 8192  ;;  %p1099_p7 = scmp.lt.u32.totalorder %s1368_s10, %s1661_s0 }
  0x35   : > { %p1096_p3 = pnand %p1095_p0, %p1094_p13  ;;  %p1100_p10 = scmp.lt.u32.totalorder %s1098_s17, %s1093_s12 }
  0x36   : > { %p1102_p2 = scmp.lt.u32.totalorder %s1093_s12, %s1368_s10 }
  0x37   : > { %p1097_p5 = pneg %p1096_p3  ;;  %p1101_p1 = por %p1100_p10, %p1099_p7 }
  0x39   : > { %p1103_p4 = por %p1102_p2, %p1101_p1 }
  0x3b   : > { %p1104_p6 = pnand %p1103_p4, %p1097_p5 }
  0x3d   : > { %1107 = shalt.err (!%p1104_p6)
}
  0x3e   : > { %s1108_s27 = scalar_lea.vmem %s1374_s29, 4096  ;;  %s1228_s8 = smov [#allocation2]  }
  0x3f   : > { %p1109_p8 = scmp.ne.s32.totalorder %s1374_s29, %s1108_s27  ;;  %s1113_s9 = sshll.u32 %s1228_s8, 4  ;;  %s1114_s9 = int_to_ptr.vmem [resolvable:$false] %s1113_s9 }
  0x40   : > { %s1115_s26 = scalar_lea.vmem %s1114_s9, 8192  ;;  %p1116_p3 = scmp.lt.s32.totalorder %s1374_s29, %s1114_s9 }
  0x41   : > { %p1111_p9 = pnand %p1109_p8, %p1095_p0  ;;  %p1117_p7 = scmp.lt.s32.totalorder %s1115_s26, %s1108_s27 }
  0x43   : > { %p1112_p13 = pneg %p1111_p9  ;;  %p1118_p10 = por %p1117_p7, %p1116_p3 }
  0x45   : > { %p1119_p1 = pnand %p1118_p10, %p1112_p13 }
  0x47   : > { %1122 = shalt.err (!%p1119_p1)
}
  0x48   : > { %1015 = dma.hbm_to_vmem [thread:$0]  (!%p1370_p12), %s1368_s10, 4096, %s1374_s29, %s1376_s11, %s1226_s14, %s1226_s14, %s1227_s15  }
  0x49   : > { %p1677_p0 = scmp.ne.s32.totalorder %s1672_s24, 0 }
  0x4a   : > { %s1410_s12 = sand.u32 (!%p1677_p0), 1, %s1215_s1   ;;  %p1678_p5 = scmp.ne.s32.totalorder (!%p1677_p0), %s1670_s22, 0 }
  0x4b   : > { %220 = sbr.rel (%p1677_p0) target bundleno = 453 (0x1c5), region = 36  ;;  %s807_s13 = sshll.u32 (!%p1677_p0), %s1410_s12, 8 }
  0x4c   : > { %s223_s16 = scalar_lea.sflag (!%p1677_p0), [#allocation3], %s1410_s12  ;;  %s1414_s17 = scalar_lea.vmem (!%p1677_p0), [#allocation2], %s807_s13 }
  0x52   : > { %1194 = dma.done.wait (%p1678_p5), %s223_s16, 4096  }
  0x53   : > { %1196 = vsyncadd (%p1678_p5), %s223_s16, 4294963200  ;;  %p1679_p12 = scmp.eq.s32.totalorder %s1285_s20, 0 }
  0x55   : > { %1198 = dma.done.wait (%p1679_p12), [#allocation6], 2048   ;;  %p1680_p2 = pmov %p1679_p12 }
  0x56   : > { %s1424_s24 = scalar_lea.vmem [#allocation7], %s807_s13  ;;  %p1681_p4 = scmp.ne.s32.totalorder %s1285_s20, 0 }
  0x57   : > { %1200 = vsyncadd (%p1680_p2), [#allocation6], 4294965248  ;;  %v1229_v0 = vmov (!%p1681_p4), 0.0  }
  0x58   : > { %262 = sbr.rel (%p1681_p4) target bundleno = 95 (0x5f), region = 48  ;;  %263 = vst [vmem:[#allocation8] sm:$0x3] (!%p1681_p4), %v1229_v0 }
  0x5f PF: > { %v296_v1 = vld [vmem:[#allocation5] sm:$0xff]  ;;  %v297_v2 = vld [vmem:[#allocation5 + $0x8] sm:$0xff]  ;;  %v298_v3 = vld [vmem:[#allocation5 + $0x10] sm:$0xff]  ;;  %s819_s22 = sshll.u32 %s1285_s20, 12  ;;  %s694_s14 = sshll.u32 %s1424_s24, 4  ;;  %s1537_s14 = int_to_ptr.vmem [resolvable:$true] %s694_s14 }
  0x60   : > { %v948_v4 = vpack.c.bf16 %v297_v2, %v296_v1  ;;  %v299_v5 = vld [vmem:[#allocation5 + $0x18] sm:$0xff]  ;;  %v300_v7 = vld [vmem:[#allocation5 + $0x20] sm:$0xff]  ;;  %v301_v8 = vld [vmem:[#allocation5 + $0x28] sm:$0xff]  ;;  %s1535_s29 = scalar_lea.hbm %s1665_s4, %s819_s22  ;;  %s681_s30 = scalar_lea.sflag [#allocation4], %s1410_s12 }
  0x61   : > { %v952_v6 = vpack.c.bf16 %v299_v5, %v298_v3  ;;  %v956_v9 = vpack.c.bf16 %v301_v8, %v300_v7  ;;  %v264_v10 = vld [vmem:[%s1414_s17] sm:$0xff]  ;;  %v302_v11 = vld [vmem:[#allocation5 + $0x30] sm:$0xff]  ;;  %v303_v12 = vld [vmem:[#allocation5 + $0x38] sm:$0xff]  ;;  %s1123_s11 = scalar_lea.vmem %s1537_s14, 4096  ;;  %s1230_s6 = smov [#allocation7]  }
  0x62   : > { %949 = vmatprep.subr.bf16.mxu0 %v948_v4  ;;  %980 = vmatprep.subr.bf16.mxu1 %v948_v4  ;;  %v960_v13 = vpack.c.bf16 %v303_v12, %v302_v11  ;;  %v304_v14 = vld [vmem:[#allocation5 + $0x40] sm:$0xff]  ;;  %v305_v15 = vld [vmem:[#allocation5 + $0x48] sm:$0xff]  ;;  %v306_v18 = vld [vmem:[#allocation5 + $0x50] sm:$0xff]  ;;  %p1124_p6 = scmp.ne.s32.totalorder %s1537_s14, %s1123_s11  ;;  %s1127_s7 = sshll.u32 %s1230_s6, 4  ;;  %s1128_s7 = int_to_ptr.vmem [resolvable:$false] %s1127_s7 }
  0x63   : > { %951 = vmatpush3.bf16.msra.mxu0 %v948_v4  ;;  %988 = vmatpush3.bf16.msra.mxu1 %v948_v4  ;;  %v280_v16 = vld [vmem:[%s1414_s17 + $0x80] sm:$0xff]  ;;  %v964_v17 = vpack.c.bf16 %v305_v15, %v304_v14  ;;  %v307_v19 = vld [vmem:[#allocation5 + $0x58] sm:$0xff]  ;;  %v309_v22 = vld [vmem:[#allocation5 + $0x68] sm:$0xff]  ;;  %s1129_s27 = scalar_lea.vmem %s1128_s7, 8192  ;;  %p1130_p13 = scmp.lt.s32.totalorder %s1537_s14, %s1128_s7 }
  0x64   : > { %953 = vmatprep.subr.bf16.mxu0 %v952_v6  ;;  %981 = vmatprep.subr.bf16.mxu1 %v952_v6  ;;  %v968_v20 = vpack.c.bf16 %v307_v19, %v306_v18  ;;  %v308_v21 = vld [vmem:[#allocation5 + $0x60] sm:$0xff]  ;;  %v310_v24 = vld [vmem:[#allocation5 + $0x70] sm:$0xff]  ;;  %v311_v25 = vld [vmem:[#allocation5 + $0x78] sm:$0xff]  ;;  %p1125_p8 = pnand %p1124_p6, %p1359_p11  ;;  %p1131_p3 = scmp.lt.s32.totalorder %s1129_s27, %s1123_s11 }
  0x65   : > { %900 = vmatprep.mubr.f32.mxu0 %v264_v10  ;;  %924 = vmatprep.mubr.f32.mxu1 %v280_v16  ;;  %v972_v23 = vpack.c.bf16 %v309_v22, %v308_v21  ;;  %v976_v26 = vpack.c.bf16 %v311_v25, %v310_v24  ;;  %v265_v27 = vld [vmem:[%s1414_s17 + $0x8] sm:$0xff]  ;;  %v266_v29 = vld [vmem:[%s1414_s17 + $0x10] sm:$0xff]  ;;  %v267_v31 = vld [vmem:[%s1414_s17 + $0x18] sm:$0xff] }
  0x66   : > { %v281_v28 = vld [vmem:[%s1414_s17 + $0x88] sm:$0xff]  ;;  %v282_v30 = vld [vmem:[%s1414_s17 + $0x90] sm:$0xff]  ;;  %v283_v32 = vld [vmem:[%s1414_s17 + $0x98] sm:$0xff]  ;;  %p1126_p9 = pneg %p1125_p8  ;;  %p1132_p7 = por %p1131_p3, %p1130_p13 }
  0x67   : > { %955 = vmatpush3.bf16.msra.mxu0 %v952_v6  ;;  %989 = vmatpush3.bf16.msra.mxu1 %v952_v6  ;;  %v268_v33 = vld [vmem:[%s1414_s17 + $0x20] sm:$0xff]  ;;  %v269_v35 = vld [vmem:[%s1414_s17 + $0x28] sm:$0xff]  ;;  %v270_v37 = vld [vmem:[%s1414_s17 + $0x30] sm:$0xff] }
  0x68   : > { %957 = vmatprep.subr.bf16.mxu0 %v956_v9  ;;  %982 = vmatprep.subr.bf16.mxu1 %v956_v9  ;;  %v284_v34 = vld [vmem:[%s1414_s17 + $0xa0] sm:$0xff]  ;;  %v285_v36 = vld [vmem:[%s1414_s17 + $0xa8] sm:$0xff]  ;;  %v286_v38 = vld [vmem:[%s1414_s17 + $0xb0] sm:$0xff]  ;;  %p1133_p10 = pnand %p1132_p7, %p1126_p9 }
  0x69   : > { %v271_v39 = vld [vmem:[%s1414_s17 + $0x38] sm:$0xff]  ;;  %v272_v41 = vld [vmem:[%s1414_s17 + $0x40] sm:$0xff]  ;;  %v273_v43 = vld [vmem:[%s1414_s17 + $0x48] sm:$0xff] }
  0x6a   : > { %v287_v40 = vld [vmem:[%s1414_s17 + $0xb8] sm:$0xff]  ;;  %v288_v42 = vld [vmem:[%s1414_s17 + $0xc0] sm:$0xff]  ;;  %v289_v44 = vld [vmem:[%s1414_s17 + $0xc8] sm:$0xff] }
  0x6b   : > { %959 = vmatpush3.bf16.msra.mxu0 %v956_v9  ;;  %990 = vmatpush3.bf16.msra.mxu1 %v956_v9  ;;  %v274_v45 = vld [vmem:[%s1414_s17 + $0x50] sm:$0xff]  ;;  %v275_v47 = vld [vmem:[%s1414_s17 + $0x58] sm:$0xff]  ;;  %v276_v49 = vld [vmem:[%s1414_s17 + $0x60] sm:$0xff] }
  0x6c   : > { %961 = vmatprep.subr.bf16.mxu0 %v960_v13  ;;  %983 = vmatprep.subr.bf16.mxu1 %v960_v13  ;;  %v290_v46 = vld [vmem:[%s1414_s17 + $0xd0] sm:$0xff]  ;;  %v291_v48 = vld [vmem:[%s1414_s17 + $0xd8] sm:$0xff]  ;;  %v292_v50 = vld [vmem:[%s1414_s17 + $0xe0] sm:$0xff] }
  0x6d   : > { %v277_v51 = vld [vmem:[%s1414_s17 + $0x68] sm:$0xff]  ;;  %v278_v53 = vld [vmem:[%s1414_s17 + $0x70] sm:$0xff]  ;;  %v279_v55 = vld [vmem:[%s1414_s17 + $0x78] sm:$0xff] }
  0x6e   : > { %v293_v52 = vld [vmem:[%s1414_s17 + $0xe8] sm:$0xff]  ;;  %v294_v54 = vld [vmem:[%s1414_s17 + $0xf0] sm:$0xff]  ;;  %v295_v56 = vld [vmem:[%s1414_s17 + $0xf8] sm:$0xff] }
  0x6f   : > { %963 = vmatpush3.bf16.msra.mxu0 %v960_v13  ;;  %991 = vmatpush3.bf16.msra.mxu1 %v960_v13 }
  0x70   : > { %965 = vmatprep.subr.bf16.mxu0 %v964_v17  ;;  %984 = vmatprep.subr.bf16.mxu1 %v964_v17 }
  0x73   : > { %967 = vmatpush3.bf16.msra.mxu0 %v964_v17  ;;  %992 = vmatpush3.bf16.msra.mxu1 %v964_v17 }
  0x74   : > { %969 = vmatprep.subr.bf16.mxu0 %v968_v20  ;;  %985 = vmatprep.subr.bf16.mxu1 %v968_v20 }
  0x77   : > { %971 = vmatpush3.bf16.msra.mxu0 %v968_v20  ;;  %993 = vmatpush3.bf16.msra.mxu1 %v968_v20 }
  0x78   : > { %973 = vmatprep.subr.bf16.mxu0 %v972_v23  ;;  %986 = vmatprep.subr.bf16.mxu1 %v972_v23 }
  0x7b   : > { %975 = vmatpush3.bf16.msra.mxu0 %v972_v23  ;;  %994 = vmatpush3.bf16.msra.mxu1 %v972_v23 }
  0x7c   : > { %977 = vmatprep.subr.bf16.mxu0 %v976_v26  ;;  %987 = vmatprep.subr.bf16.mxu1 %v976_v26 }
  0x7f   : > { %979 = vmatpush3.bf16.msra.mxu0 %v976_v26  ;;  %995 = vmatpush3.bf16.msra.mxu1 %v976_v26 }
  0x82   : > { %901 = vmatmul.mubr.f32.vlgmr.msra.gmra.mrb[0].mxu0 %v265_v27  ;;  %925 = vmatmul.mubr.f32.vlgmr.msra.gmra.mrb[0].mxu1 %v281_v28 }
  0x83   : > { %903 = vmatprep.mubr.f32.mxu0 %v266_v29  ;;  %927 = vmatprep.mubr.f32.mxu1 %v282_v30 }
  0x86   : > { %904 = vmatmul.mubr.f32.gmra.mrb[2].mxu0 %v267_v31  ;;  %928 = vmatmul.mubr.f32.gmra.mrb[2].mxu1 %v283_v32 }
  0x87   : > { %906 = vmatprep.mubr.f32.mxu0 %v268_v33  ;;  %930 = vmatprep.mubr.f32.mxu1 %v284_v34 }
  0x8a   : > { %907 = vmatmul.mubr.f32.gmra.mrb[4].mxu0 %v269_v35  ;;  %931 = vmatmul.mubr.f32.gmra.mrb[4].mxu1 %v285_v36 }
  0x8b   : > { %909 = vmatprep.mubr.f32.mxu0 %v270_v37  ;;  %933 = vmatprep.mubr.f32.mxu1 %v286_v38 }
  0x8e   : > { %910 = vmatmul.mubr.f32.gmra.mrb[6].mxu0 %v271_v39  ;;  %934 = vmatmul.mubr.f32.gmra.mrb[6].mxu1 %v287_v40 }
  0x8f   : > { %912 = vmatprep.mubr.f32.mxu0 %v272_v41  ;;  %936 = vmatprep.mubr.f32.mxu1 %v288_v42 }
  0x92   : > { %913 = vmatmul.mubr.f32.gmra.mrb[8].mxu0 %v273_v43  ;;  %937 = vmatmul.mubr.f32.gmra.mrb[8].mxu1 %v289_v44 }
  0x93   : > { %915 = vmatprep.mubr.f32.mxu0 %v274_v45  ;;  %939 = vmatprep.mubr.f32.mxu1 %v290_v46 }
  0x96   : > { %916 = vmatmul.mubr.f32.gmra.mrb[10].mxu0 %v275_v47  ;;  %940 = vmatmul.mubr.f32.gmra.mrb[10].mxu1 %v291_v48 }
  0x97   : > { %918 = vmatprep.mubr.f32.mxu0 %v276_v49  ;;  %942 = vmatprep.mubr.f32.mxu1 %v292_v50 }
  0x9a   : > { %919 = vmatmul.mubr.f32.gmra.mrb[12].mxu0 %v277_v51  ;;  %943 = vmatmul.mubr.f32.gmra.mrb[12].mxu1 %v293_v52 }
  0x9b   : > { %921 = vmatprep.mubr.f32.mxu0 %v278_v53  ;;  %945 = vmatprep.mubr.f32.mxu1 %v294_v54 }
  0x9e   : > { %922 = vmatmul.mubr.f32.gmra.mrb[14].mxu0 %v279_v55  ;;  %946 = vmatmul.mubr.f32.gmra.mrb[14].mxu1 %v295_v56 }
 0x155   : > { %v902_v57 = vpop.f32.mrb[0].mxu0  ;;  %v1460_v58 = vpop.f32.mrb[0].mxu1 }
 0x156   : > { %538 = vst [vmem:[%s1424_s24 + $0x8] sm:$0xff] %v902_v57  ;;  %v607_v59 = vmul.f32 %v902_v57, %v902_v57  ;;  %v378_v60 = vpop.f32.mrb[1].mxu0  ;;  %554 = vst [vmem:[%s1424_s24 + $0x88] sm:$0xff] %v1460_v58  ;;  %v1465_v61 = vpop.f32.mrb[1].mxu1 }
 0x157   : > { %537 = vst [vmem:[%s1424_s24] sm:$0xff] %v378_v60  ;;  %v569_v62 = vadd.f32 %v902_v57, %v378_v60  ;;  %v606_v63 = vmul.f32 %v378_v60, %v378_v60  ;;  %553 = vst [vmem:[%s1424_s24 + $0x80] sm:$0xff] %v1465_v61 }
 0x159   : > { %v638_v0 = vadd.f32 %v607_v59, %v606_v63  ;;  %v905_v1 = vpop.f32.mrb[2].mxu0  ;;  %v1470_v2 = vpop.f32.mrb[2].mxu1 }
 0x15a   : > { %540 = vst [vmem:[%s1424_s24 + $0x18] sm:$0xff] %v905_v1  ;;  %v388_v3 = vpop.f32.mrb[3].mxu0  ;;  %556 = vst [vmem:[%s1424_s24 + $0x98] sm:$0xff] %v1470_v2  ;;  %v1475_v4 = vpop.f32.mrb[3].mxu1  ;;  %v609_v7 = vmul.f32 %v905_v1, %v905_v1 }
 0x15b   : > { %539 = vst [vmem:[%s1424_s24 + $0x10] sm:$0xff] %v388_v3  ;;  %v570_v5 = vadd.f32 %v569_v62, %v388_v3  ;;  %v608_v6 = vmul.f32 %v388_v3, %v388_v3  ;;  %555 = vst [vmem:[%s1424_s24 + $0x90] sm:$0xff] %v1475_v4 }
 0x15d   : > { %v639_v8 = vadd.f32 %v638_v0, %v608_v6  ;;  %v908_v9 = vpop.f32.mrb[4].mxu0  ;;  %v571_v10 = vadd.f32 %v905_v1, %v570_v5  ;;  %v1480_v11 = vpop.f32.mrb[4].mxu1 }
 0x15e   : > { %542 = vst [vmem:[%s1424_s24 + $0x28] sm:$0xff] %v908_v9  ;;  %v398_v12 = vpop.f32.mrb[5].mxu0  ;;  %558 = vst [vmem:[%s1424_s24 + $0xa8] sm:$0xff] %v1480_v11  ;;  %v1485_v13 = vpop.f32.mrb[5].mxu1  ;;  %v611_v17 = vmul.f32 %v908_v9, %v908_v9 }
 0x15f   : > { %541 = vst [vmem:[%s1424_s24 + $0x20] sm:$0xff] %v398_v12  ;;  %v572_v14 = vadd.f32 %v571_v10, %v398_v12  ;;  %v610_v15 = vmul.f32 %v398_v12, %v398_v12  ;;  %v640_v16 = vadd.f32 %v639_v8, %v609_v7  ;;  %557 = vst [vmem:[%s1424_s24 + $0xa0] sm:$0xff] %v1485_v13 }
 0x161   : > { %v641_v18 = vadd.f32 %v640_v16, %v610_v15  ;;  %v911_v19 = vpop.f32.mrb[6].mxu0  ;;  %v573_v20 = vadd.f32 %v908_v9, %v572_v14  ;;  %v1490_v21 = vpop.f32.mrb[6].mxu1 }
 0x162   : > { %544 = vst [vmem:[%s1424_s24 + $0x38] sm:$0xff] %v911_v19  ;;  %v408_v22 = vpop.f32.mrb[7].mxu0  ;;  %560 = vst [vmem:[%s1424_s24 + $0xb8] sm:$0xff] %v1490_v21  ;;  %v1495_v23 = vpop.f32.mrb[7].mxu1  ;;  %v613_v27 = vmul.f32 %v911_v19, %v911_v19 }
 0x163   : > { %543 = vst [vmem:[%s1424_s24 + $0x30] sm:$0xff] %v408_v22  ;;  %v574_v24 = vadd.f32 %v573_v20, %v408_v22  ;;  %v612_v25 = vmul.f32 %v408_v22, %v408_v22  ;;  %v642_v26 = vadd.f32 %v641_v18, %v611_v17  ;;  %559 = vst [vmem:[%s1424_s24 + $0xb0] sm:$0xff] %v1495_v23 }
 0x165   : > { %v643_v28 = vadd.f32 %v642_v26, %v612_v25  ;;  %v914_v29 = vpop.f32.mrb[8].mxu0  ;;  %v575_v30 = vadd.f32 %v911_v19, %v574_v24  ;;  %v1500_v31 = vpop.f32.mrb[8].mxu1 }
 0x166   : > { %546 = vst [vmem:[%s1424_s24 + $0x48] sm:$0xff] %v914_v29  ;;  %v418_v32 = vpop.f32.mrb[9].mxu0  ;;  %562 = vst [vmem:[%s1424_s24 + $0xc8] sm:$0xff] %v1500_v31  ;;  %v1505_v33 = vpop.f32.mrb[9].mxu1  ;;  %v615_v37 = vmul.f32 %v914_v29, %v914_v29 }
 0x167   : > { %545 = vst [vmem:[%s1424_s24 + $0x40] sm:$0xff] %v418_v32  ;;  %v576_v34 = vadd.f32 %v575_v30, %v418_v32  ;;  %v614_v35 = vmul.f32 %v418_v32, %v418_v32  ;;  %v644_v36 = vadd.f32 %v643_v28, %v613_v27  ;;  %561 = vst [vmem:[%s1424_s24 + $0xc0] sm:$0xff] %v1505_v33 }
 0x169   : > { %v645_v38 = vadd.f32 %v644_v36, %v614_v35  ;;  %v917_v39 = vpop.f32.mrb[10].mxu0  ;;  %v577_v40 = vadd.f32 %v914_v29, %v576_v34  ;;  %v1510_v41 = vpop.f32.mrb[10].mxu1 }
 0x16a   : > { %548 = vst [vmem:[%s1424_s24 + $0x58] sm:$0xff] %v917_v39  ;;  %v428_v42 = vpop.f32.mrb[11].mxu0  ;;  %564 = vst [vmem:[%s1424_s24 + $0xd8] sm:$0xff] %v1510_v41  ;;  %v1515_v43 = vpop.f32.mrb[11].mxu1  ;;  %v617_v47 = vmul.f32 %v917_v39, %v917_v39 }
 0x16b   : > { %547 = vst [vmem:[%s1424_s24 + $0x50] sm:$0xff] %v428_v42  ;;  %v578_v44 = vadd.f32 %v577_v40, %v428_v42  ;;  %v616_v45 = vmul.f32 %v428_v42, %v428_v42  ;;  %v646_v46 = vadd.f32 %v645_v38, %v615_v37  ;;  %563 = vst [vmem:[%s1424_s24 + $0xd0] sm:$0xff] %v1515_v43 }
 0x16d   : > { %v647_v48 = vadd.f32 %v646_v46, %v616_v45  ;;  %v920_v49 = vpop.f32.mrb[12].mxu0  ;;  %v579_v50 = vadd.f32 %v917_v39, %v578_v44  ;;  %v1520_v51 = vpop.f32.mrb[12].mxu1 }
 0x16e   : > { %550 = vst [vmem:[%s1424_s24 + $0x68] sm:$0xff] %v920_v49  ;;  %v438_v52 = vpop.f32.mrb[13].mxu0  ;;  %566 = vst [vmem:[%s1424_s24 + $0xe8] sm:$0xff] %v1520_v51  ;;  %v1527_v53 = vpop.f32.mrb[13].mxu1  ;;  %v619_v57 = vmul.f32 %v920_v49, %v920_v49 }
 0x16f   : > { %549 = vst [vmem:[%s1424_s24 + $0x60] sm:$0xff] %v438_v52  ;;  %v580_v54 = vadd.f32 %v579_v50, %v438_v52  ;;  %v618_v55 = vmul.f32 %v438_v52, %v438_v52  ;;  %v648_v56 = vadd.f32 %v647_v48, %v617_v47  ;;  %565 = vst [vmem:[%s1424_s24 + $0xe0] sm:$0xff] %v1527_v53 }
 0x171   : > { %v649_v59 = vadd.f32 %v648_v56, %v618_v55  ;;  %v923_v60 = vpop.f32.mrb[14].mxu0  ;;  %v581_v62 = vadd.f32 %v920_v49, %v580_v54  ;;  %v1539_v63 = vpop.f32.mrb[14].mxu1 }
 0x172   : > { %552 = vst [vmem:[%s1424_s24 + $0x78] sm:$0xff] %v923_v60  ;;  %v448_v0 = vpop.f32.mrb[15].mxu0  ;;  %568 = vst [vmem:[%s1424_s24 + $0xf8] sm:$0xff] %v1539_v63  ;;  %v1544_v1 = vpop.f32.mrb[15].mxu1 }
 0x173   : > { %551 = vst [vmem:[%s1424_s24 + $0x70] sm:$0xff] %v448_v0  ;;  %v582_v3 = vadd.f32 %v581_v62, %v448_v0  ;;  %v620_v5 = vmul.f32 %v448_v0, %v448_v0  ;;  %v650_v6 = vadd.f32 %v649_v59, %v619_v57  ;;  %567 = vst [vmem:[%s1424_s24 + $0xf0] sm:$0xff] %v1544_v1 }
 0x174   : > { %1136 = shalt.err (!%p1133_p10)
}
 0x175   : > { %s1137_s8 = scalar_lea.hbm %s1535_s29, 4096  ;;  %s1141_s13 = scalar_lea.hbm %s1665_s4, 8192 }
 0x176   : > { %p1138_p1 = scmp.ne.s32.totalorder %s1535_s29, %s1137_s8  ;;  %p1142_p12 = scmp.lt.u32.totalorder %s1535_s29, %s1665_s4 }
 0x177   : > { %p1143_p2 = scmp.lt.u32.totalorder %s1141_s13, %s1137_s8  ;;  %p1145_p6 = scmp.lt.u32.totalorder %s1137_s8, %s1535_s29 }
 0x178   : > { %p1139_p0 = pnand %p1138_p1, %p1359_p11 }
 0x179   : > { %p1144_p4 = por %p1143_p2, %p1142_p12 }
 0x17a   : > { %p1140_p5 = pneg %p1139_p0 }
 0x17b   : > { %p1146_p8 = por %p1145_p6, %p1144_p4 }
 0x17d   : > { %p1147_p9 = pnand %p1146_p8, %p1140_p5 }
 0x17f   : > { %1150 = shalt.err (!%p1147_p9)
}
 0x180   : > { %s1231_s24 = smov 128   ;;  %s1232_s22 = smov 8   ;;  %v621_v7 = vmul.f32 %v923_v60, %v923_v60  ;;  %v583_v8 = vadd.f32 %v923_v60, %v582_v3  ;;  %v651_v9 = vadd.f32 %v650_v6, %v620_v5  ;;  %v622_v10 = vmul.f32 %v1465_v61, %v1465_v61 }
 0x181   : > { %1002 = dma.vmem_to_hbm [thread:$0]  (%p1359_p11), %s1537_s14, 4096, %s1535_s29, %s681_s30, %s1231_s24, %s1231_s24, %s1232_s22   ;;  %v623_v15 = vmul.f32 %v1460_v58, %v1460_v58  ;;  %v624_v18 = vmul.f32 %v1475_v4, %v1475_v4  ;;  %v625_v22 = vmul.f32 %v1470_v2, %v1470_v2  ;;  %vm676_vm0 = vcmask 1040384  }
 0x182   : > { %v652_v12 = vadd.f32 %v651_v9, %v621_v7  ;;  %v584_v14 = vadd.f32 %v583_v8, %v1465_v61  ;;  %v626_v61 = vmul.f32 %v1485_v13, %v1485_v13  ;;  %v675_v8 = vld [vmem:[#allocation8] sm:$0x3]  ;;  %s1233_s25 = smov [#allocation8]   ;;  %p1682_p13 = scmp.eq.s32.totalorder %s1285_s20, 1 }
 0x183   : > { %s708_s12 = sshll.u32 %s1233_s25, 4  ;;  %s709_s12 = int_to_ptr.vmem [resolvable:$true] %s708_s12 }
 0x184   : > { %v653_v16 = vadd.f32 %v652_v12, %v622_v10  ;;  %v585_v17 = vadd.f32 %v1460_v58, %v584_v14  ;;  %v627_v58 = vmul.f32 %v1480_v11, %v1480_v11  ;;  %s1151_s14 = scalar_lea.vmem %s709_s12, 32  ;;  %p1158_p10 = scmp.lt.s32.totalorder %s709_s12, %s709_s12 }
 0x185   : > { %p1152_p11 = scmp.ne.s32.totalorder %s709_s12, %s1151_s14  ;;  %p1159_p1 = scmp.lt.s32.totalorder %s1151_s14, %s1151_s14 }
 0x186   : > { %v586_v19 = vadd.f32 %v585_v17, %v1475_v4  ;;  %v654_v20 = vadd.f32 %v653_v16, %v623_v15  ;;  %v628_v4 = vmul.f32 %v1495_v23, %v1495_v23 }
 0x187   : > { %p1153_p3 = pnand %p1152_p11, %p1682_p13  ;;  %p1160_p0 = por %p1159_p1, %p1158_p10 }
 0x188   : > { %v655_v24 = vadd.f32 %v654_v20, %v624_v18  ;;  %v587_v25 = vadd.f32 %v1470_v2, %v586_v19  ;;  %v629_v2 = vmul.f32 %v1490_v21, %v1490_v21 }
 0x189   : > { %p1154_p7 = pneg %p1153_p3 }
 0x18a   : > { %v588_v26 = vadd.f32 %v587_v25, %v1485_v13  ;;  %v656_v27 = vadd.f32 %v655_v24, %v625_v22  ;;  %v630_v13 = vmul.f32 %v1505_v33, %v1505_v33 }
 0x18b   : > { %p1161_p5 = pnand %p1160_p0, %p1154_p7 }
 0x18c   : > { %v657_v28 = vadd.f32 %v656_v27, %v626_v61  ;;  %v589_v29 = vadd.f32 %v1480_v11, %v588_v26  ;;  %v631_v11 = vmul.f32 %v1500_v31, %v1500_v31 }
 0x18e   : > { %v590_v30 = vadd.f32 %v589_v29, %v1495_v23  ;;  %v658_v32 = vadd.f32 %v657_v28, %v627_v58  ;;  %v632_v23 = vmul.f32 %v1515_v43, %v1515_v43 }
 0x190   : > { %v659_v34 = vadd.f32 %v658_v32, %v628_v4  ;;  %v591_v35 = vadd.f32 %v1490_v21, %v590_v30  ;;  %v633_v21 = vmul.f32 %v1510_v41, %v1510_v41 }
 0x192   : > { %v592_v36 = vadd.f32 %v591_v35, %v1505_v33  ;;  %v660_v37 = vadd.f32 %v659_v34, %v629_v2  ;;  %v634_v33 = vmul.f32 %v1527_v53, %v1527_v53 }
 0x194   : > { %v661_v38 = vadd.f32 %v660_v37, %v630_v13  ;;  %v593_v39 = vadd.f32 %v1500_v31, %v592_v36  ;;  %v635_v31 = vmul.f32 %v1520_v51, %v1520_v51 }
 0x196   : > { %v594_v40 = vadd.f32 %v593_v39, %v1515_v43  ;;  %v662_v42 = vadd.f32 %v661_v38, %v631_v11  ;;  %v636_v43 = vmul.f32 %v1544_v1, %v1544_v1 }
 0x198   : > { %v663_v44 = vadd.f32 %v662_v42, %v632_v23  ;;  %v595_v45 = vadd.f32 %v1510_v41, %v594_v40  ;;  %v637_v41 = vmul.f32 %v1539_v63, %v1539_v63 }
 0x19a   : > { %v596_v46 = vadd.f32 %v595_v45, %v1527_v53  ;;  %v664_v47 = vadd.f32 %v663_v44, %v633_v21 }
 0x19c   : > { %v665_v48 = vadd.f32 %v664_v47, %v634_v33  ;;  %v597_v49 = vadd.f32 %v1520_v51, %v596_v46 }
 0x19e   : > { %v598_v50 = vadd.f32 %v597_v49, %v1544_v1  ;;  %v666_v52 = vadd.f32 %v665_v48, %v635_v31 }
 0x1a0   : > { %v599_v54 = vadd.f32 %v1539_v63, %v598_v50  ;;  %v667_v55 = vadd.f32 %v666_v52, %v636_v43 }
 0x1a2   : > { %v600_v53 = vrot.slane %v599_v54, 4  ;;  %v668_v56 = vadd.f32 %v667_v55, %v637_v41 }
 0x1a4   : > { %v601_v57 = vadd.f32 %v600_v53, %v599_v54  ;;  %v669_v59 = vrot.slane %v668_v56, 4 }
 0x1a6   : > { %v602_v60 = vrot.slane %v601_v57, 2  ;;  %v670_v62 = vadd.f32 %v669_v59, %v668_v56 }
 0x1a8   : > { %v603_v0 = vadd.f32 %v602_v60, %v601_v57  ;;  %v671_v51 = vrot.slane %v670_v62, 2 }
 0x1aa   : > { %v604_v3 = vrot.slane %v603_v0, 1  ;;  %v672_v5 = vadd.f32 %v671_v51, %v670_v62 }
 0x1ac   : > { %v673_v6 = vrot.slane %v672_v5, 1  ;;  %v605_v1 = vadd.f32 %v604_v3, %v603_v0 }
 0x1ae   : > { %v674_v7 = vadd.f32 %v673_v6, %v672_v5 }
 0x1b0   : > { %v677_v63 = vsel %vm676_vm0, %v605_v1, %v674_v7 }
 0x1b1   : > { %v678_v9 = vadd.f32 %v677_v63, %v675_v8 }
 0x1b3   : > { %679 = vst [vmem:[#allocation8] sm:$0x3] %v678_v9 }
 0x1b4   : > { %1164 = shalt.err (!%p1161_p5)
}
 0x1b5   : > { %s1165_s29 = scalar_lea.hbm %s1666_s5, 32  ;;  %p1683_p2 = pmov %p1682_p13 }
 0x1b6   : > { %p1166_p12 = scmp.ne.s32.totalorder %s1666_s5, %s1165_s29  ;;  %p1171_p8 = scmp.lt.u32.totalorder %s1165_s29, %s1666_s5 }
 0x1b8   : > { %p1167_p4 = pnand %p1166_p12, %p1683_p2 }
 0x1ba   : > { %p1168_p6 = pneg %p1167_p4 }
 0x1bc   : > { %p1173_p9 = pnand %p1171_p8, %p1168_p6 }
 0x1be   : > { %1176 = shalt.err (!%p1173_p9)
}
 0x1bf   : > { %p1684_p11 = pmov %p1683_p2  ;;  %p1685_p13 = pmov %p1683_p2 }
 0x1c1   : > { %1004 = dma.vmem_to_hbm [thread:$0]  (%p1684_p11), %s709_s12, 32, %s1666_s5, [#allocation9]  }
 0x1c2   : > { %1202 = dma.done.wait (%p1685_p13), [#allocation9], 32   ;;  %p1686_p3 = pmov %p1683_p2 }
 0x1c4   : > { %1204 = vsyncadd (%p1686_p3), [#allocation9], 4294967264 }
 0x1c5 PF: > { %s724_s9 = sand.u32 1, %s1211_s18   ;;  %p1687_p7 = scmp.ne.s32.totalorder %s1671_s23, 0 }
 0x1c6   : > { %p1688_p10 = scmp.ge.s32.totalorder %s1223_s19, 2  ;;  %s725_s26 = scalar_lea.sflag [#allocation4], %s724_s9 }
 0x1c8   : > { %p1017_p1 = pnand %p1688_p10, %p1687_p7 }
 0x1ca   : > { %1206 = dma.done.wait (!%p1017_p1), %s725_s26, 4096  }
 0x1cb   : > { %1208 = vsyncadd (!%p1017_p1), %s725_s26, 4294963200  ;;  %p21_p0 = scmp.ge.s32.totalorder %s1321_s28, 4   ;;  %s1689_s18 = smov %s1215_s1 }
 0x1cc   : > { %s1690_s1 = smov %s1219_s2  ;;  %s1691_s2 = smov %s1355_s21 }
 0x1cd   : > { %s1692_s19 = smov %s1321_s28  ;;  %23 = sbr.rel (!%p21_p0) target bundleno = 7 (0x7), region = 97 }
 0x1d4   :  { %730 = vsyncpa [#allocation3], 1 }
 0x1d5   :  { %732 = vsyncpa [#allocation3 + $0x1], 1 }
 0x1d6   :  { %733 = vsyncpa [#allocation6], 1 }
 0x1d7   :  { %734 = vsyncpa [#allocation4], 1 }
 0x1d8   :  { %736 = vsyncpa [#allocation4 + $0x1], 1 }
 0x1d9   :  { %737 = vsyncpa [#allocation9], 1 }

</bundles_post_ra>
